<compile_context>
chip_gen: v7x
topology: tpu7x:2x2x1
jax: 0.10.0
libtpu: 0.0.40
codegen_flags: <defaults>
</compile_context>

<pallas_src>
import math
from functools import partial

import numpy as np
import jax
import jax.numpy as jnp
from jax.experimental import pallas as pl
from jax.experimental.pallas import tpu as pltpu


# ---------------------------------------------------------------------------
# Canonical lane-dense layout helpers (host-side glue)
# ---------------------------------------------------------------------------

_LANES = 128              # minimal lane width
_WIDE_COLS = 1024         # lane width used for large flattened tensors
_MAX_TILE_ROWS = 512      # rows per grid step (multiple of 8)
_PAD_LOGIT = -1e9         # sigmoid(pad - shift) == 0 -> padding adds 0 penalty
_VMEM_LIMIT_BYTES = 32 * 1024 * 1024


def _cdiv(a, b):
    return -(-a // b)


def _pick_tile_rows(rows):
    if rows <= _MAX_TILE_ROWS:
        return rows
    for t in (_MAX_TILE_ROWS, 256, 128, 64, 32, 16, 8):
        if rows % t == 0:
            return t
    return None


def _plan_layout(shape):
    """Pick the lane-dense 2-D layout (rows, cols, tile_rows, needs_reshape).

    needs_reshape == False means the native 2-D array is used zero-copy
    (no pad on input, no slice on output)."""
    n = int(np.prod(shape))
    if len(shape) == 2 and shape[1] % _LANES == 0:
        tile_rows = _pick_tile_rows(shape[0])
        if tile_rows is not None:
            return shape[0], shape[1], tile_rows, False
    # Fallback: flatten + pad to a canonical lane-dense 2-D slab.
    cols = _WIDE_COLS if n >= 8 * _WIDE_COLS else _LANES
    rows = _cdiv(n, cols)
    tile_rows = min(rows, _MAX_TILE_ROWS)
    rows = _cdiv(rows, tile_rows) * tile_rows
    return rows, cols, tile_rows, True


def _to_layout(x, rows, cols, needs_reshape, pad_value):
    if not needs_reshape:
        return x
    flat = x.reshape(-1)
    n = flat.shape[0]
    n_pad = rows * cols
    if n_pad != n:
        flat = jnp.pad(flat, (0, n_pad - n), constant_values=pad_value)
    return flat.reshape(rows, cols)


def _from_layout(y2, gate_size, needs_reshape):
    if not needs_reshape:
        return y2
    n = int(np.prod(gate_size))
    return y2.reshape(-1)[:n].reshape(gate_size)


# ---------------------------------------------------------------------------
# In-kernel helpers
# ---------------------------------------------------------------------------

def _sigmoid(x):
    # single EUP transcendental (tanh) instead of exp + reciprocal
    return 0.5 * jnp.tanh(0.5 * x) + 0.5


def _hard_concrete_gate(logits, u, temperature, gamma, zeta):
    # logistic noise: log(u / (1 - u)) -> one log + one reciprocal/divide
    noise = jnp.log(u / (1.0 - u))
    s = _sigmoid((noise + logits) * (1.0 / temperature))
    return jnp.clip(s * (zeta - gamma) + gamma, 0.0, 1.0)


def _penalty_rows(p):
    """(tile_rows, cols) -> (8, cols): row 0 = sublane-reduced partial, rest 0.

    Lane-dense, (8,128)-conformant per-tile partials keep the grid axis
    "parallel" (so v7x megacore can shard it); the final reduction over the
    tiny (8 * n_tiles, cols) partials array happens outside the kernel."""
    cols = p.shape[1]
    partial = jnp.sum(p, axis=0, keepdims=True)                    # (1, cols)
    row_idx = jax.lax.broadcasted_iota(jnp.int32, (8, cols), 0)
    return jnp.where(row_idx == 0, partial, 0.0)


# ---------------------------------------------------------------------------
# Pallas kernels
# ---------------------------------------------------------------------------

def _sample_gates_kernel(logits_ref, u_ref, out_ref, *, temperature, gamma, zeta):
    g = _hard_concrete_gate(logits_ref[...], u_ref[...], temperature, gamma, zeta)
    out_ref[...] = g.astype(out_ref.dtype)


def _deterministic_gates_kernel(logits_ref, out_ref, *, gamma, zeta):
    s = _sigmoid(logits_ref[...]) * (zeta - gamma) + gamma
    out_ref[...] = jnp.clip(s, 0.0, 1.0).astype(out_ref.dtype)


def _active_prob_kernel(logits_ref, out_ref, *, shift):
    out_ref[...] = _sigmoid(logits_ref[...] - shift).astype(out_ref.dtype)


def _penalty_partial_kernel(logits_ref, pen_ref, *, shift):
    pen_ref[...] = _penalty_rows(_sigmoid(logits_ref[...] - shift))


def _sample_and_penalty_kernel(logits_ref, u_ref, gates_ref, pen_ref, *,
                               temperature, gamma, zeta, shift):
    # Fused training path: one HBM pass over logits, gates + penalty partials.
    logits = logits_ref[...]
    g = _hard_concrete_gate(logits, u_ref[...], temperature, gamma, zeta)
    gates_ref[...] = g.astype(gates_ref.dtype)
    pen_ref[...] = _penalty_rows(_sigmoid(logits - shift))


def _det_and_penalty_kernel(logits_ref, gates_ref, pen_ref, *, gamma, zeta, shift):
    # Fused eval path: one HBM pass over logits, gates + penalty partials.
    logits = logits_ref[...]
    s = _sigmoid(logits) * (zeta - gamma) + gamma
    gates_ref[...] = jnp.clip(s, 0.0, 1.0).astype(gates_ref.dtype)
    pen_ref[...] = _penalty_rows(_sigmoid(logits - shift))


# ---------------------------------------------------------------------------
# JAX wrapper mirroring the PyTorch module
# ---------------------------------------------------------------------------

class HardConcrete:
    """JAX/Pallas port of the PyTorch HardConcrete module (forward semantics)."""

    def __init__(self, input_dim, output_dim=None, temperature=0.5, stretch=0.1,
                 init_mean=0.5, gate_dtype=jnp.float32):
        if output_dim is None:
            self.gate_size = (input_dim,)
        else:
            self.gate_size = (input_dim, output_dim)
        self.temperature = float(temperature)
        self.stretch = float(stretch)
        self.gamma = -0.1
        self.zeta = 1.1
        self.init_mean = init_mean
        self.gate_dtype = gate_dtype   # bf16 here saves ~25% HBM write traffic
        init_val = 0.0
        if init_mean is not None:
            init_val = math.log(init_mean / (1.0 - init_mean))
        self.qz_logits = jnp.full(self.gate_size, init_val, dtype=jnp.float32)
        self.training = True

    # -- internals ----------------------------------------------------------

    def _shift(self):
        return self.temperature * math.log(-self.gamma / self.zeta)

    def _run(self, kernel, inputs, rows, cols, tile_rows, out_dtype, with_penalty):
        n_tiles = rows // tile_rows
        block = pl.BlockSpec((tile_rows, cols), lambda i: (i, 0))
        in_specs = [block] * len(inputs)
        if with_penalty:
            out_shape = (jax.ShapeDtypeStruct((rows, cols), out_dtype),
                         jax.ShapeDtypeStruct((n_tiles * 8, cols), jnp.float32))
            out_specs = (block, pl.BlockSpec((8, cols), lambda i: (i, 0)))
        else:
            out_shape = jax.ShapeDtypeStruct((rows, cols), out_dtype)
            out_specs = block
        return pl.pallas_call(
            kernel,
            out_shape=out_shape,
            grid=(n_tiles,),
            in_specs=in_specs,
            out_specs=out_specs,
            compiler_params=pltpu.CompilerParams(
                dimension_semantics=("parallel",),
                vmem_limit_bytes=_VMEM_LIMIT_BYTES),
        )(*inputs)

    def _sample_gates(self, key, with_penalty=False):
        rows, cols, tile_rows, needs_reshape = _plan_layout(self.gate_size)
        logits2 = _to_layout(self.qz_logits, rows, cols, needs_reshape, _PAD_LOGIT)
        # TODO(synk): on real TPU an in-kernel pltpu.prng_random_bits draw would
        # halve HBM reads, but prng_seed has no CPU/interpret lowering, so the
        # uniform noise is generated host-side and streamed in lane-dense.
        u2 = jax.random.uniform(key, (rows, cols), jnp.float32,
                                minval=1e-8, maxval=1.0 - 1e-8)
        if with_penalty:
            kernel = partial(_sample_and_penalty_kernel,
                             temperature=self.temperature, gamma=self.gamma,
                             zeta=self.zeta, shift=self._shift())
            gates2, pen = self._run(kernel, (logits2, u2), rows, cols, tile_rows,
                                    self.gate_dtype, True)
            return _from_layout(gates2, self.gate_size, needs_reshape), jnp.sum(pen)
        kernel = partial(_sample_gates_kernel, temperature=self.temperature,
                         gamma=self.gamma, zeta=self.zeta)
        gates2 = self._run(kernel, (logits2, u2), rows, cols, tile_rows,
                           self.gate_dtype, False)
        return _from_layout(gates2, self.gate_size, needs_reshape)

    def _deterministic_gates(self, with_penalty=False):
        rows, cols, tile_rows, needs_reshape = _plan_layout(self.gate_size)
        logits2 = _to_layout(self.qz_logits, rows, cols, needs_reshape, _PAD_LOGIT)
        if with_penalty:
            kernel = partial(_det_and_penalty_kernel, gamma=self.gamma,
                             zeta=self.zeta, shift=self._shift())
            gates2, pen = self._run(kernel, (logits2,), rows, cols, tile_rows,
                                    self.gate_dtype, True)
            return _from_layout(gates2, self.gate_size, needs_reshape), jnp.sum(pen)
        kernel = partial(_deterministic_gates_kernel, gamma=self.gamma, zeta=self.zeta)
        gates2 = self._run(kernel, (logits2,), rows, cols, tile_rows,
                           self.gate_dtype, False)
        return _from_layout(gates2, self.gate_size, needs_reshape)

    # -- public API ---------------------------------------------------------

    def forward(self, input_shape=None, key=None):
        if self.training:
            if key is None:
                key = jax.random.PRNGKey(0)
            gates = self._sample_gates(key)
        else:
            gates = self._deterministic_gates()
        if input_shape is not None and len(input_shape) > gates.ndim:
            gates = gates[..., None, None]   # unsqueeze(-1).unsqueeze(-1)
        return gates

    def forward_with_penalty(self, input_shape=None, key=None):
        """Fused forward + L0 penalty: one HBM pass over qz_logits."""
        if self.training:
            if key is None:
                key = jax.random.PRNGKey(0)
            gates, pen = self._sample_gates(key, with_penalty=True)
        else:
            gates, pen = self._deterministic_gates(with_penalty=True)
        if input_shape is not None and len(input_shape) > gates.ndim:
            gates = gates[..., None, None]
        return gates, pen

    def get_penalty(self):
        rows, cols, tile_rows, needs_reshape = _plan_layout(self.gate_size)
        logits2 = _to_layout(self.qz_logits, rows, cols, needs_reshape, _PAD_LOGIT)
        n_tiles = rows // tile_rows
        kernel = partial(_penalty_partial_kernel, shift=self._shift())
        pen = pl.pallas_call(
            kernel,
            out_shape=jax.ShapeDtypeStruct((n_tiles * 8, cols), jnp.float32),
            grid=(n_tiles,),
            in_specs=[pl.BlockSpec((tile_rows, cols), lambda i: (i, 0))],
            out_specs=pl.BlockSpec((8, cols), lambda i: (i, 0)),
            compiler_params=pltpu.CompilerParams(
                dimension_semantics=("parallel",),
                vmem_limit_bytes=_VMEM_LIMIT_BYTES),
        )(logits2)
        return jnp.sum(pen)

    def get_active_prob(self):
        rows, cols, tile_rows, needs_reshape = _plan_layout(self.gate_size)
        logits2 = _to_layout(self.qz_logits, rows, cols, needs_reshape, _PAD_LOGIT)
        kernel = partial(_active_prob_kernel, shift=self._shift())
        p2 = self._run(kernel, (logits2,), rows, cols, tile_rows, jnp.float32, False)
        return _from_layout(p2, self.gate_size, needs_reshape)


# ---------------------------------------------------------------------------
# Pure-JAX references for verification
# ---------------------------------------------------------------------------

def _ref_sample(logits, u, temperature=0.5, gamma=-0.1, zeta=1.1):
    s = jnp.log(u) - jnp.log(1.0 - u) + logits
    s = jax.nn.sigmoid(s / temperature)
    return jnp.clip(s * (zeta - gamma) + gamma, 0.0, 1.0)


def _ref_deterministic(logits, gamma=-0.1, zeta=1.1):
    p = jax.nn.sigmoid(logits)
    return jnp.clip(p * (zeta - gamma) + gamma, 0.0, 1.0)


def _ref_penalty(logits, temperature=0.5, gamma=-0.1, zeta=1.1):
    shift = temperature * math.log(-gamma / zeta)
    return jnp.sum(jax.nn.sigmoid(logits - shift))


def _ref_active_prob(logits, temperature=0.5, gamma=-0.1, zeta=1.1):
    shift = temperature * math.log(-gamma / zeta)
    return jax.nn.sigmoid(logits - shift)


if __name__ == "__main__":
    input_dim, output_dim = 8, 128
    key = jax.random.PRNGKey(0)
    logit_key, noise_key, big_key = jax.random.split(key, 3)

    hc = HardConcrete(input_dim, output_dim, temperature=0.5, init_mean=0.5)
    hc.qz_logits = jax.random.normal(logit_key, hc.gate_size, dtype=jnp.float32)

    # ---- training path (sampled gates, fused gates+penalty) ----------------
    hc.training = True
    gates_train = hc.forward(key=noise_key)
    gates_fused, pen_fused = hc.forward_with_penalty(key=noise_key)
    jax.block_until_ready((gates_train, gates_fused, pen_fused))

    # fast path is zero-copy: kernel layout == native (8,128), so the exact
    # same uniform draw can be reproduced for a bit-level-ish reference.
    u_ref = jax.random.uniform(noise_key, hc.gate_size, jnp.float32,
                               minval=1e-8, maxval=1.0 - 1e-8)
    ref_train = _ref_sample(hc.qz_logits, u_ref)
    assert gates_train.shape == hc.gate_size
    assert jnp.allclose(gates_train, ref_train, atol=1e-4)
    assert jnp.allclose(gates_fused, gates_train, atol=1e-5)
    assert jnp.allclose(pen_fused, _ref_penalty(hc.qz_logits), rtol=1e-5, atol=1e-2)

    # ---- eval path (deterministic gates, fused eval penalty) ---------------
    hc.training = False
    gates_eval = hc.forward(input_shape=(2, input_dim, output_dim, 16, 16))
    gates_eval_f, pen_eval = hc.forward_with_penalty()
    penalty = hc.get_penalty()
    active_prob = hc.get_active_prob()
    jax.block_until_ready((gates_eval, gates_eval_f, pen_eval, penalty, active_prob))

    ref_eval = _ref_deterministic(hc.qz_logits)
    assert gates_eval.shape == (input_dim, output_dim, 1, 1)
    assert jnp.allclose(gates_eval[..., 0, 0], ref_eval, atol=1e-5)
    assert jnp.allclose(gates_eval_f, ref_eval, atol=1e-5)
    assert jnp.allclose(penalty, _ref_penalty(hc.qz_logits), rtol=1e-5, atol=1e-2)
    assert jnp.allclose(pen_eval, penalty, rtol=1e-5, atol=1e-2)
    assert jnp.allclose(active_prob, _ref_active_prob(hc.qz_logits), atol=1e-5)

    # ---- 1-D (output_dim=None), non-lane-aligned size: pad fallback --------
    hc1d = HardConcrete(100, None, temperature=0.5, init_mean=0.5)
    hc1d.qz_logits = jax.random.normal(jax.random.PRNGKey(7), (100,), jnp.float32)
    hc1d.training = True
    gates_1d_train = hc1d.forward(key=noise_key)
    hc1d.training = False
    gates_1d = hc1d.forward()
    pen_1d = hc1d.get_penalty()
    jax.block_until_ready((gates_1d_train, gates_1d, pen_1d))

    u1d_layout = jax.random.uniform(noise_key, (1, 128), jnp.float32,
                                    minval=1e-8, maxval=1.0 - 1e-8)
    ref_1d_train = _ref_sample(hc1d.qz_logits, u1d_layout.reshape(-1)[:100])
    assert gates_1d_train.shape == (100,)
    assert jnp.allclose(gates_1d_train, ref_1d_train, atol=1e-4)
    assert gates_1d.shape == (100,)
    assert jnp.allclose(gates_1d, _ref_deterministic(hc1d.qz_logits), atol=1e-5)
    assert jnp.allclose(pen_1d, _ref_penalty(hc1d.qz_logits), rtol=1e-5, atol=1e-2)

    # ---- multi-tile case (grid > 1): parallel per-tile penalty partials ----
    hc_big = HardConcrete(1024, 128, temperature=0.5, init_mean=0.5)
    hc_big.qz_logits = jax.random.normal(big_key, hc_big.gate_size, jnp.float32)
    hc_big.training = False
    pen_big = hc_big.get_penalty()
    gates_big = hc_big.forward()
    jax.block_until_ready((pen_big, gates_big))
    assert jnp.allclose(pen_big, _ref_penalty(hc_big.qz_logits), rtol=5e-4, atol=1.0)
    assert jnp.allclose(gates_big, _ref_deterministic(hc_big.qz_logits), atol=1e-5)

    print("KERNEL_OK")
</pallas_src>

<mosaic_0001>
module attributes {stable_mosaic.version = 11 : i64} {
  func.func @_sample_gates_kernel(%arg0: i32, %arg1: memref<8x128xf32, #tpu.memory_space<vmem>>, %arg2: memref<8x128xf32, #tpu.memory_space<vmem>>, %arg3: memref<8x128xf32, #tpu.memory_space<vmem>>) attributes {dimension_semantics = [#tpu.dimension_semantics<parallel>], iteration_bounds = array<i64: 1>, scalar_prefetch = 0 : i64, scratch_operands = 0 : i64, tpu.core_type = #tpu.core_type<tc>, window_params = [{transform_indices = @transform_0, window_bounds = array<i64: 8, 128>}, {transform_indices = @transform_1, window_bounds = array<i64: 8, 128>}, {transform_indices = @transform_2, window_bounds = array<i64: 8, 128>}]} {
    %c0 = arith.constant 0 : index
    %c0_0 = arith.constant 0 : index
    %0 = vector.load %arg1[%c0, %c0_0] : memref<8x128xf32, #tpu.memory_space<vmem>>, vector<8x128xf32>
    %c0_1 = arith.constant 0 : index
    %c0_2 = arith.constant 0 : index
    %1 = vector.load %arg2[%c0_1, %c0_2] : memref<8x128xf32, #tpu.memory_space<vmem>>, vector<8x128xf32>
    %cst = arith.constant 1.000000e+00 : f32
    %2 = vector.broadcast %cst : f32 to vector<8x128xf32>
    %3 = arith.subf %2, %1 : vector<8x128xf32>
    %4 = arith.divf %1, %3 : vector<8x128xf32>
    %5 = math.log %4 : vector<8x128xf32>
    %6 = arith.addf %5, %0 : vector<8x128xf32>
    %cst_3 = arith.constant 2.000000e+00 : f32
    %7 = vector.broadcast %cst_3 : f32 to vector<8x128xf32>
    %8 = arith.mulf %6, %7 : vector<8x128xf32>
    %cst_4 = arith.constant 5.000000e-01 : f32
    %9 = vector.broadcast %cst_4 : f32 to vector<8x128xf32>
    %10 = arith.mulf %9, %8 : vector<8x128xf32>
    %11 = math.tanh %10 : vector<8x128xf32>
    %cst_5 = arith.constant 5.000000e-01 : f32
    %12 = vector.broadcast %cst_5 : f32 to vector<8x128xf32>
    %13 = arith.mulf %12, %11 : vector<8x128xf32>
    %cst_6 = arith.constant 5.000000e-01 : f32
    %14 = vector.broadcast %cst_6 : f32 to vector<8x128xf32>
    %15 = arith.addf %13, %14 : vector<8x128xf32>
    %cst_7 = arith.constant 1.200000e+00 : f32
    %16 = vector.broadcast %cst_7 : f32 to vector<8x128xf32>
    %17 = arith.mulf %15, %16 : vector<8x128xf32>
    %cst_8 = arith.constant -1.000000e-01 : f32
    %18 = vector.broadcast %cst_8 : f32 to vector<8x128xf32>
    %19 = arith.addf %17, %18 : vector<8x128xf32>
    %cst_9 = arith.constant 0.000000e+00 : f32
    %cst_10 = arith.constant 1.000000e+00 : f32
    %20 = vector.broadcast %cst_9 : f32 to vector<8x128xf32>
    %21 = arith.maximumf %20, %19 : vector<8x128xf32>
    %22 = vector.broadcast %cst_10 : f32 to vector<8x128xf32>
    %23 = arith.minimumf %22, %21 : vector<8x128xf32>
    %c0_11 = arith.constant 0 : index
    %c0_12 = arith.constant 0 : index
    %24 = vector.load %arg3[%c0_11, %c0_12] : memref<8x128xf32, #tpu.memory_space<vmem>>, vector<8x128xf32>
    tpu.vector_store %arg3[%c0_11, %c0_12], %23 {strides = array<i32>} : memref<8x128xf32, #tpu.memory_space<vmem>>, vector<8x128xf32>,
    return
  }
  func.func @transform_0(%arg0: i32) -> (i32, i32) {
    %c0_i32 = arith.constant 0 : i32
    %c0_i32_0 = arith.constant 0 : i32
    return %arg0, %c0_i32 : i32, i32
  }
  func.func @transform_1(%arg0: i32) -> (i32, i32) {
    %c0_i32 = arith.constant 0 : i32
    %c0_i32_0 = arith.constant 0 : i32
    return %arg0, %c0_i32 : i32, i32
  }
  func.func @transform_2(%arg0: i32) -> (i32, i32) {
    %c0_i32 = arith.constant 0 : i32
    %c0_i32_0 = arith.constant 0 : i32
    return %arg0, %c0_i32 : i32, i32
  }
}

</mosaic_0001>

<bundles_post_ra>
// kernel: tpu_custom_call.1
= control target key start
LH: loop header
LB: loop body
LE: loop exit
PB: predicated region body
PF: predicated region fallthrough
CT: control target
= control target key end

     0   :  { %7 = vsyncpa [#allocation3], 0  ;;  %s205_s0 = inlined_call_operand.hbm [shape: f32[8,128], index: 0, kind: input, shape index: {}]   ;;  %s206_s1 = inlined_call_operand.hbm [shape: f32[8,128], index: 1, kind: input, shape index: {}]   ;;  %s207_s2 = inlined_call_operand.hbm [shape: f32[8,128], index: 2, kind: output, shape index: {}]  }
   0x1   :  { %8 = vsyncpa [#allocation6], 0 }
   0x2   :  { %9 = vsyncpa [#allocation4], 0  ;;  %s151_s9 = smov [#allocation2]   ;;  %s152_s11 = smov [#allocation5]  }
   0x3   :  { %s16_s10 = sshll.u32 %s151_s9, 4  ;;  %s26_s12 = sshll.u32 %s152_s11, 4  ;;  %s17_s10 = int_to_ptr.vmem [resolvable:$true] %s16_s10  ;;  %s27_s12 = int_to_ptr.vmem [resolvable:$true] %s26_s12 }
   0x4   :  { %s79_s15 = scalar_lea.hbm %s205_s0, 128 }
   0x5   :  { %p80_p0 = scmp.ne.s32.totalorder %s205_s0, %s79_s15  ;;  %p83_p1 = scmp.lt.u32.totalorder %s79_s15, %s205_s0 }
   0x7   :  { %p85_p2 = pnand %p83_p1, %p80_p0 }
   0x9   :  { %88 = shalt.err (!%p85_p2)
}
   0xa   :  { %s89_s20 = scalar_lea.vmem %s17_s10, 128  ;;  %p94_p4 = scmp.lt.s32.totalorder %s17_s10, %s17_s10 }
   0xb   :  { %p90_p3 = scmp.ne.s32.totalorder %s17_s10, %s89_s20  ;;  %p95_p5 = scmp.lt.s32.totalorder %s89_s20, %s89_s20 }
   0xd   :  { %p96_p6 = por %p95_p5, %p94_p4 }
   0xf   :  { %p97_p7 = pnand %p96_p6, %p90_p3 }
  0x11   :  { %100 = shalt.err (!%p97_p7)
}
  0x12   :  { %19 = dma.hbm_to_vmem [thread:$0]  %s205_s0, 128, %s17_s10, [#allocation3]  }
  0x13   :  { %s101_s25 = scalar_lea.hbm %s206_s1, 128 }
  0x14   :  { %p102_p8 = scmp.ne.s32.totalorder %s206_s1, %s101_s25  ;;  %p105_p9 = scmp.lt.u32.totalorder %s101_s25, %s206_s1 }
  0x16   :  { %p107_p10 = pnand %p105_p9, %p102_p8 }
  0x18   :  { %110 = shalt.err (!%p107_p10)
}
  0x19   :  { %s111_s30 = scalar_lea.vmem %s27_s12, 128  ;;  %p116_p12 = scmp.lt.s32.totalorder %s27_s12, %s27_s12 }
  0x1a   :  { %p112_p11 = scmp.ne.s32.totalorder %s27_s12, %s111_s30  ;;  %p117_p13 = scmp.lt.s32.totalorder %s111_s30, %s111_s30 }
  0x1c   :  { %p118_p0 = por %p117_p13, %p116_p12 }
  0x1e   :  { %p119_p1 = pnand %p118_p0, %p112_p11 }
  0x20   :  { %122 = shalt.err (!%p119_p1)
}
  0x21   :  { %29 = dma.hbm_to_vmem [thread:$0]  %s206_s1, 128, %s27_s12, [#allocation6]  }
  0x22   :  { %145 = dma.done.wait [#allocation3], 128  }
  0x23   :  { %146 = vsyncadd [#allocation3], 4294967168 }
  0x24   :  { %147 = dma.done.wait [#allocation6], 128  }
  0x25   :  { %148 = vsyncadd [#allocation6], 4294967168  ;;  %v37_v0 = vld [vmem:[#allocation5] sm:$0xff]  ;;  %v36_v5 = vld [vmem:[#allocation2] sm:$0xff]  ;;  %s153_s1 = smov [#allocation7]  }
  0x26   :  { %v38_v1 = vsub.f32 1.0, %v37_v0  ;;  %s60_s4 = sshll.u32 %s153_s1, 4  ;;  %s61_s4 = int_to_ptr.vmem [resolvable:$true] %s60_s4 }
  0x27   :  { %s123_s5 = scalar_lea.vmem %s61_s4, 128  ;;  %p128_p3 = scmp.lt.s32.totalorder %s61_s4, %s61_s4 }
  0x28   :  { %73 = vrcp.f32 %v38_v1  ;;  %p124_p2 = scmp.ne.s32.totalorder %s61_s4, %s123_s5  ;;  %p129_p4 = scmp.lt.s32.totalorder %s123_s5, %s123_s5 }
  0x2a   :  { %p130_p5 = por %p129_p4, %p128_p3 }
  0x2c   :  { %p131_p6 = pnand %p130_p5, %p124_p2 }
  0x32   :  { %v74_v2 = vpop.eup %73 }
  0x33   :  { %v40_v3 = vmul.f32 %v74_v2, %v37_v0 }
  0x35   :  { %75 = vlog2.f32 %v40_v3 }
  0x3f   :  { %v76_v4 = vpop.eup %75 }
  0x40   :  { %v42_v6 = vmul.f32 0.6931472, %v76_v4 }
  0x42   :  { %v43_v7 = vadd.f32 %v42_v6, %v36_v5 }
  0x44   :  { %v44_v8 = vmul.f32 2.0, %v43_v7 }
  0x46   :  { %v45_v9 = vmul.f32 0.5, %v44_v8 }
  0x48   :  { %77 = vtanh.f32 %v45_v9 }
  0x52   :  { %v78_v10 = vpop.eup %77 }
  0x53   :  { %v47_v11 = vmul.f32 0.5, %v78_v10 }
  0x55   :  { %v48_v12 = vadd.f32 0.5, %v47_v11 }
  0x57   :  { %v49_v13 = vmul.f32 1.2, %v48_v12 }
  0x59   :  { %v50_v14 = vadd.f32 -0.1, %v49_v13 }
  0x5b   :  { %v51_v15 = vmax.f32 %v50_v14, 0.0 }
  0x5d   :  { %v52_v16 = vmin.f32 %v51_v15, 1.0 }
  0x5f   :  { %53 = vst [vmem:[#allocation7] sm:$0xff] %v52_v16 }
  0x60   :  { %134 = shalt.err (!%p131_p6)
}
  0x61   :  { %s135_s8 = scalar_lea.hbm %s207_s2, 128 }
  0x62   :  { %p136_p7 = scmp.ne.s32.totalorder %s207_s2, %s135_s8  ;;  %p139_p8 = scmp.lt.u32.totalorder %s135_s8, %s207_s2 }
  0x64   :  { %p141_p9 = pnand %p139_p8, %p136_p7 }
  0x66   :  { %144 = shalt.err (!%p141_p9)
}
  0x67   :  { %63 = dma.vmem_to_hbm [thread:$0]  %s61_s4, 128, %s207_s2, [#allocation4]  }
  0x68   :  { %149 = dma.done.wait [#allocation4], 128  }
  0x69   :  { %150 = vsyncadd [#allocation4], 4294967168 }
  0x6a   :  { %67 = vsyncpa [#allocation3], 1 }
  0x6b   :  { %68 = vsyncpa [#allocation6], 1 }
  0x6c   :  { %69 = vsyncpa [#allocation4], 1 }

</bundles_post_ra>
